<compile_context>
chip_gen: v7x
topology: tpu7x:2x2x1
jax: 0.10.0
libtpu: 0.0.40
codegen_flags: <defaults>
</compile_context>

<pallas_src>
import jax
import jax.numpy as jnp
from jax import lax
from jax.experimental import pallas as pl
from jax.experimental.pallas import tpu as pltpu


def _random_stars_kernel(seed_ref, out_ref):
    """Scalar-only kernel: fmix32(seed) -> uniform integer in [0, 10) -> f32."""
    h = seed_ref[0]  # int32 scalar in SMEM

    # murmur3 fmix32 integer hash, all in int32 (wrapping arithmetic).
    # Logical shifts keep the mixing correct without needing uint32.
    h = h ^ lax.shift_right_logical(h, jnp.int32(16))
    h = h * jnp.int32(-2048144789)   # 0x85EBCA6B as signed int32
    h = h ^ lax.shift_right_logical(h, jnp.int32(13))
    h = h * jnp.int32(-1028477387)   # 0xC2B2AE35 as signed int32
    h = h ^ lax.shift_right_logical(h, jnp.int32(16))

    # Top 24 bits -> uniform integer in [0, 10) via fixed-point multiply
    # (same distribution as torch.randint(0, 10, (1,)) up to ~1/1.67M bias).
    u24 = lax.shift_right_logical(h, jnp.int32(8))                       # [0, 2^24)
    stars = lax.shift_right_logical(u24 * jnp.int32(10), jnp.int32(24))  # 0..9

    out_ref[0] = stars.astype(jnp.float32)


_random_stars_call = pl.pallas_call(
    _random_stars_kernel,
    out_shape=jax.ShapeDtypeStruct((1,), jnp.float32),
    in_specs=[pl.BlockSpec(memory_space=pltpu.MemorySpace.SMEM)],   # seed (1,) i32
    out_specs=pl.BlockSpec(memory_space=pltpu.MemorySpace.SMEM),    # (1,) f32
)


@jax.jit
def random_stars(user_id: jax.Array, song_id: jax.Array, seed: jax.Array) -> jax.Array:
    """Pallas equivalent of RandomStars.forward(user_id, song_id) -> f32[1]."""
    # The reference module ignores its inputs entirely.
    del user_id, song_id
    return _random_stars_call(seed)


def _reference_stars(seed: int) -> float:
    """Pure-Python unsigned-32-bit reference for the kernel's hash path."""
    h = seed & 0xFFFFFFFF
    h ^= h >> 16
    h = (h * 0x85EBCA6B) & 0xFFFFFFFF
    h ^= h >> 13
    h = (h * 0xC2B2AE35) & 0xFFFFFFFF
    h ^= h >> 16
    u24 = h >> 8
    return float((u24 * 10) >> 24)


if __name__ == "__main__":
    num_users, num_songs = 100, 50
    batch = 2

    key = jax.random.PRNGKey(0)
    k_user, k_song, k_seed = jax.random.split(key, 3)

    user_id = jax.random.randint(k_user, (batch,), 0, num_users, dtype=jnp.int32)
    song_id = jax.random.randint(k_song, (batch,), 0, num_songs, dtype=jnp.int32)
    seed = jax.random.randint(k_seed, (1,), 0, 2**31 - 1, dtype=jnp.int32)

    out = random_stars(user_id, song_id, seed)
    out = jax.block_until_ready(out)

    assert out.shape == (1,)
    assert out.dtype == jnp.float32
    assert 0.0 <= float(out[0]) <= 9.0
    assert float(out[0]) == float(int(out[0]))      # integer-valued
    # Guard the int32 wrap / logical-shift semantics against a host reference.
    assert float(out[0]) == _reference_stars(int(seed[0]))

    print("KERNEL_OK")
</pallas_src>

<mosaic_0001>
module attributes {stable_mosaic.version = 11 : i64} {
  func.func @_random_stars_kernel(%arg0: memref<1xi32, #tpu.memory_space<smem>>, %arg1: memref<1xf32, #tpu.memory_space<smem>>) attributes {dimension_semantics = [], scalar_prefetch = 0 : i64, scratch_operands = 0 : i64, tpu.core_type = #tpu.core_type<tc>} {
    %c0 = arith.constant 0 : index
    %0 = memref.load %arg0[%c0] : memref<1xi32, #tpu.memory_space<smem>>
    %c16_i32 = arith.constant 16 : i32
    %1 = arith.shrui %0, %c16_i32 : i32
    %2 = arith.xori %0, %1 : i32
    %c-2048144789_i32 = arith.constant -2048144789 : i32
    %3 = arith.muli %2, %c-2048144789_i32 : i32
    %c13_i32 = arith.constant 13 : i32
    %4 = arith.shrui %3, %c13_i32 : i32
    %5 = arith.xori %3, %4 : i32
    %c-1028477387_i32 = arith.constant -1028477387 : i32
    %6 = arith.muli %5, %c-1028477387_i32 : i32
    %c16_i32_0 = arith.constant 16 : i32
    %7 = arith.shrui %6, %c16_i32_0 : i32
    %8 = arith.xori %6, %7 : i32
    %c8_i32 = arith.constant 8 : i32
    %9 = arith.shrui %8, %c8_i32 : i32
    %c10_i32 = arith.constant 10 : i32
    %10 = arith.muli %9, %c10_i32 : i32
    %c24_i32 = arith.constant 24 : i32
    %11 = arith.shrui %10, %c24_i32 : i32
    %12 = arith.sitofp %11 : i32 to f32
    %c0_1 = arith.constant 0 : index
    %13 = memref.load %arg1[%c0_1] : memref<1xf32, #tpu.memory_space<smem>>
    memref.store %12, %arg1[%c0_1] : memref<1xf32, #tpu.memory_space<smem>>
    return
  }
}

</mosaic_0001>

<bundles_post_ra>
// kernel: random_stars.1
= control target key start
LH: loop header
LB: loop body
LE: loop exit
PB: predicated region body
PF: predicated region fallthrough
CT: control target
= control target key end

     0   :  { %7 = vsyncpa [#allocation4], 0  ;;  %s80_s0 = inlined_call_operand.<no memory space> [shape: s32[1], index: 0, kind: input, shape index: {}]   ;;  %s81_s1 = inlined_call_operand.hbm [shape: f32[1], index: 1, kind: output, shape index: {}]  }
   0x1   :  { %s11_s8 = sshrl.u32 %s80_s0, 16  ;;  %s39_s24 = scalar_lea.hbm %s81_s1, 16 }
   0x2   :  { %s12_s11 = sxor.u32 %s11_s8, %s80_s0  ;;  %p40_p0 = scmp.ne.s32.totalorder %s81_s1, %s39_s24 }
   0x3   :  { %s13_s12 = smul.u32 2246822507, %s12_s11  ;;  %p43_p1 = scmp.lt.u32.totalorder %s39_s24, %s81_s1 }
   0x5   :  { %s14_s13 = sshrl.u32 %s13_s12, 13  ;;  %p45_p2 = pnand %p43_p1, %p40_p0 }
   0x6   :  { %s15_s14 = sxor.u32 %s14_s13, %s13_s12 }
   0x7   :  { %s16_s15 = smul.u32 3266489909, %s15_s14 }
   0x9   :  { %s17_s16 = sshrl.u32 %s16_s15, 16 }
   0xa   :  { %s18_s17 = sxor.u32 %s17_s16, %s16_s15 }
   0xb   :  { %s19_s18 = sshrl.u32 %s18_s17, 8 }
   0xc   :  { %s20_s19 = smul.u32 10, %s19_s18 }
   0xe   :  { %s21_s20 = sshrl.u32 %s20_s19, 24 }
   0xf   :  { %s22_s21 = scvt.s32.f32 %s21_s20 }
  0x11   :  { %24 = sst [smem:[#allocation3]] %s22_s21 }
  0x12   :  { %48 = shalt.err (!%p45_p2)
}
  0x13   :  { %s51_s28 = smov [#allocation3]  }
  0x14   :  { %32 = dma.smem_to_hbm %s51_s28, 16, %s81_s1, [#allocation4]  }
  0x15   :  { %49 = dma.done.wait [#allocation4], 16  }
  0x16   :  { %50 = vsyncadd [#allocation4], 4294967280 }
  0x17   :  { %36 = sfence }
  0x18   :  { %37 = vsyncpa [#allocation4], 1 }

</bundles_post_ra>
